<compile_context>
chip_gen: v7x
topology: tpu7x:2x2x1
jax: 0.10.0
libtpu: 0.0.40
codegen_flags: <defaults>
</compile_context>

<pallas_src>
import functools

import jax
import jax.numpy as jnp
from jax import lax
from jax.experimental import pallas as pl
from jax.experimental.pallas import tpu as pltpu


# ---------------------------------------------------------------------------
# Kernel
# ---------------------------------------------------------------------------
def _sdpa_kernel(q_ref, k_ref, v_ref, o_ref, attn_ref, *, inv_temperature,
                 use_bf16_matmul):
    # q_ref: (1, tq, Dk)   k_ref: (1, Lk, Dk)   v_ref: (1, Lk, Dv)
    q = q_ref[0]          # (tq, Dk)
    k = k_ref[0]          # (Lk, Dk)
    v = v_ref[0]          # (Lk, Dv)

    # Fold 1/temperature into q (tq*Dk elements instead of tq*Lk scores) and
    # use a multiply rather than a divide.
    q = q * jnp.asarray(inv_temperature, dtype=q.dtype)

    if use_bf16_matmul and q.dtype == jnp.float32:
        # f32 matmuls take the slow multi-pass MXU path; bf16 inputs with f32
        # accumulation are ~4x faster on v6e/v7x and accurate enough here.
        q = q.astype(jnp.bfloat16)
        k = k.astype(jnp.bfloat16)

    # scores[i, j] = sum_d q[i, d] * k[j, d] — contract dim 1 of both operands
    # so the MXU is fed directly (no per-step XLU transpose of k).
    scores = lax.dot_general(
        q, k, (((1,), (1,)), ((), ())),
        preferred_element_type=jnp.float32)                 # (tq, Lk) f32

    # Numerically stable softmax over the key axis (dim=2 in the module).
    m = jnp.max(scores, axis=-1, keepdims=True)
    e = jnp.exp(scores - m)
    denom = jnp.sum(e, axis=-1, keepdims=True)
    # Exact reciprocal of the (tq, 1) denominator: attn is a *returned* value,
    # so we do not use the approximate EUP reciprocal on it (the exact divide
    # touches only tq values; the broadcast multiply is the same either way).
    attn = e * (1.0 / denom)                                # (tq, Lk) f32

    pv_dtype = v.dtype
    if use_bf16_matmul and pv_dtype == jnp.float32:
        pv_dtype = jnp.bfloat16
    out = jnp.dot(attn.astype(pv_dtype), v.astype(pv_dtype),
                  preferred_element_type=jnp.float32)       # (tq, Dv) f32

    attn_ref[0] = attn.astype(attn_ref.dtype)
    o_ref[0] = out.astype(o_ref.dtype)


# ---------------------------------------------------------------------------
# Tiling / VMEM heuristics
# ---------------------------------------------------------------------------
def _min_sublane(dtype):
    # Minimum second-minor tile: 8 for 4-byte, 16 for 2-byte, 32 for 1-byte.
    return {4: 8, 2: 16, 1: 32}.get(jnp.dtype(dtype).itemsize, 8)


def _vmem_limit_bytes():
    """Generation-aware scoped-VMEM limit (~96 MiB v5e/v6e, ~48 MiB v7x)."""
    cap = 64 * 1024 * 1024  # conservative default = v7x physical VMEM
    try:
        cap = int(getattr(pltpu.get_tpu_info(), "vmem_capacity_bytes", cap))
    except Exception:
        pass
    return max(min((cap * 3) // 4, 96 * 1024 * 1024), 32 * 1024 * 1024)


def _pick_q_tile(B, Lq, Lk, Dk, Dv, in_dtype, attn_dtype, budget_bytes,
                 kv_buffers):
    """Largest q-tile whose VMEM working set fits the budget."""
    itemsize = jnp.dtype(in_dtype).itemsize
    attn_itemsize = jnp.dtype(attn_dtype).itemsize
    min_tq = max(_min_sublane(in_dtype), _min_sublane(attn_dtype))
    lq_cap = max(min_tq, pl.cdiv(Lq, min_tq) * min_tq)   # Lq rounded up

    chosen = min_tq
    for tq in (1024, 512, 256, 128, 64, 32, 16, 8):
        if tq < min_tq or tq > lq_cap:
            continue
        if B == 1 and tq >= lq_cap and lq_cap > min_tq:
            # Keep >= 2 grid steps so the second v7x TensorCore isn't idle.
            continue
        # Double-buffered q input + output blocks, kv_buffers-deep K/V blocks,
        # plus the f32 softmax temporaries (scores, e, attn) and the f32 out.
        q_out_blocks = 2 * ((tq * Dk + tq * Dv) * itemsize
                            + tq * Lk * attn_itemsize)
        kv_blocks = kv_buffers * (Lk * Dk + Lk * Dv) * itemsize
        temps = 3 * tq * Lk * 4 + tq * Dv * 4
        if q_out_blocks + kv_blocks + temps <= budget_bytes:
            chosen = tq
            break
    return chosen


# ---------------------------------------------------------------------------
# pallas_call wrapper
# ---------------------------------------------------------------------------
def _sdpa_call(q, k, v, temperature, attn_dtype, use_bf16_matmul, kv_buffers,
               vmem_limit):
    B, Lq, Dk = q.shape
    _, Lk, _ = k.shape
    _, _, Dv = v.shape

    budget = (vmem_limit * 17) // 20       # ~85%: headroom for compiler scratch
    tq = _pick_q_tile(B, Lq, Lk, Dk, Dv, q.dtype, attn_dtype, budget,
                      kv_buffers)
    n_q = pl.cdiv(Lq, tq)
    Lq_pad = n_q * tq
    if Lq_pad != Lq:
        # q rows are independent; zero-pad and slice the outputs back.
        q = jnp.pad(q, ((0, 0), (0, Lq_pad - Lq), (0, 0)))

    kernel = functools.partial(
        _sdpa_kernel,
        inv_temperature=1.0 / float(temperature),
        use_bf16_matmul=use_bf16_matmul)

    def kv_spec(shape):
        # K/V block index is constant across the q-tile axis, so single-
        # buffering halves their VMEM footprint; the exposed DMA happens only
        # once per batch element.
        if kv_buffers == 1:
            return pl.BlockSpec(shape, lambda b, qi: (b, 0, 0),
                                pipeline_mode=pl.Buffered(1))
        return pl.BlockSpec(shape, lambda b, qi: (b, 0, 0))

    grid_spec = pltpu.PrefetchScalarGridSpec(
        num_scalar_prefetch=0,
        grid=(B, n_q),
        in_specs=[
            pl.BlockSpec((1, tq, Dk), lambda b, qi: (b, qi, 0)),
            kv_spec((1, Lk, Dk)),
            kv_spec((1, Lk, Dv)),
        ],
        out_specs=[
            pl.BlockSpec((1, tq, Dv), lambda b, qi: (b, qi, 0)),
            pl.BlockSpec((1, tq, Lk), lambda b, qi: (b, qi, 0)),
        ],
    )

    in_itemsize = jnp.dtype(q.dtype).itemsize
    cost = pl.CostEstimate(
        flops=2 * B * Lq_pad * Lk * (Dk + Dv),
        transcendentals=B * Lq_pad * Lk,
        bytes_accessed=(B * (Lq_pad * Dk + Lk * Dk + Lk * Dv) * in_itemsize
                        + B * Lq_pad * Dv * in_itemsize
                        + B * Lq_pad * Lk * jnp.dtype(attn_dtype).itemsize),
    )

    out, attn = pl.pallas_call(
        kernel,
        out_shape=(
            jax.ShapeDtypeStruct((B, Lq_pad, Dv), q.dtype),
            jax.ShapeDtypeStruct((B, Lq_pad, Lk), attn_dtype),
        ),
        grid_spec=grid_spec,
        compiler_params=pltpu.CompilerParams(
            dimension_semantics=("parallel", "parallel"),
            vmem_limit_bytes=vmem_limit,
        ),
        cost_estimate=cost,
    )(q, k, v)

    if Lq_pad != Lq:
        out = out[:, :Lq]
        attn = attn[:, :Lq]
    return out, attn


def scaled_dot_product_attention(q, k, v, temperature, *, attn_dtype=None,
                                 use_bf16_matmul=False):
    """q: (B, Lq, Dk), k: (B, Lk, Dk), v: (B, Lk, Dv) -> (output, attn).

    attn_dtype: dtype of the returned attention matrix.  The (B, Lq, Lk)
      writeback dominates HBM traffic at long Lk; pass jnp.bfloat16 to halve
      it when downstream consumers tolerate bf16.
    use_bf16_matmul: for f32 inputs, run QK^T / PV in bf16 with f32
      accumulation (~4x MXU throughput on v6e/v7x, ~1e-2 accuracy).
    """
    attn_dtype = q.dtype if attn_dtype is None else jnp.dtype(attn_dtype)
    vmem_limit = _vmem_limit_bytes()

    # Prefer single-buffered K/V; if this Pallas/Mosaic build rejects
    # Buffered(1), fall back to the default double-buffered pipeline.
    try:
        result = _sdpa_call(q, k, v, temperature, attn_dtype, use_bf16_matmul,
                            kv_buffers=1, vmem_limit=vmem_limit)
        jax.block_until_ready(result)
        return result
    except Exception:
        return _sdpa_call(q, k, v, temperature, attn_dtype, use_bf16_matmul,
                          kv_buffers=2, vmem_limit=vmem_limit)


# ---------------------------------------------------------------------------
# Reference & self-test
# ---------------------------------------------------------------------------
def _reference(q, k, v, temperature):
    hp = jax.lax.Precision.HIGHEST
    attn = jnp.einsum("bqd,bkd->bqk", q, k, precision=hp) / temperature
    attn = jax.nn.softmax(attn, axis=2)
    out = jnp.einsum("bqk,bkd->bqd", attn, v, precision=hp)
    return out, attn


if __name__ == "__main__":
    key = jax.random.PRNGKey(0)
    kq, kk, kv_ = jax.random.split(key, 3)

    B, Lq, Lk, Dk, Dv = 2, 8, 8, 32, 32
    temperature = float(Dk) ** 0.5

    q = jax.random.normal(kq, (B, Lq, Dk), dtype=jnp.float32)
    k = jax.random.normal(kk, (B, Lk, Dk), dtype=jnp.float32)
    v = jax.random.normal(kv_, (B, Lk, Dv), dtype=jnp.float32)

    out_ref, attn_ref = _reference(q, k, v, temperature)

    # Exact (semantics-preserving) path.
    out, attn = scaled_dot_product_attention(q, k, v, temperature)
    jax.block_until_ready((out, attn))
    assert out.shape == (B, Lq, Dv) and attn.shape == (B, Lq, Lk)
    assert jnp.allclose(out, out_ref, atol=2e-3, rtol=2e-3)
    assert jnp.allclose(attn, attn_ref, atol=2e-3, rtol=2e-3)

    # Fast path: bf16 matmuls + bf16 attn writeback (halves the dominant HBM
    # store; ~4x MXU throughput for f32 inputs).
    out_f, attn_f = scaled_dot_product_attention(
        q, k, v, temperature, attn_dtype=jnp.bfloat16, use_bf16_matmul=True)
    jax.block_until_ready((out_f, attn_f))
    assert jnp.allclose(out_f, out_ref, atol=5e-2, rtol=5e-2)
    assert jnp.allclose(attn_f.astype(jnp.float32), attn_ref,
                        atol=5e-2, rtol=5e-2)

    print("KERNEL_OK")
</pallas_src>

<mosaic_0001>
module attributes {stable_mosaic.version = 11 : i64} {
  func.func @_sdpa_kernel(%arg0: i32, %arg1: i32, %arg2: memref<1x8x32xf32, #tpu.memory_space<vmem>>, %arg3: memref<1x8x32xf32, #tpu.memory_space<vmem>>, %arg4: memref<1x8x32xf32, #tpu.memory_space<vmem>>, %arg5: memref<1x8x32xf32, #tpu.memory_space<vmem>>, %arg6: memref<1x8x8xf32, #tpu.memory_space<vmem>>) attributes {dimension_semantics = [#tpu.dimension_semantics<parallel>, #tpu.dimension_semantics<parallel>], iteration_bounds = array<i64: 2, 1>, scalar_prefetch = 0 : i64, scratch_operands = 0 : i64, tpu.core_type = #tpu.core_type<tc>, window_params = [{transform_indices = @transform_0, window_bounds = array<i64: 1, 8, 32>}, {pipeline_mode = #tpu.pipeline_mode<synchronous>, transform_indices = @transform_1, window_bounds = array<i64: 1, 8, 32>}, {pipeline_mode = #tpu.pipeline_mode<synchronous>, transform_indices = @transform_2, window_bounds = array<i64: 1, 8, 32>}, {transform_indices = @transform_3, window_bounds = array<i64: 1, 8, 32>}, {transform_indices = @transform_4, window_bounds = array<i64: 1, 8, 8>}]} {
    %c0 = arith.constant 0 : index
    %c0_0 = arith.constant 0 : index
    %c0_1 = arith.constant 0 : index
    %0 = vector.load %arg2[%c0, %c0_0, %c0_1] : memref<1x8x32xf32, #tpu.memory_space<vmem>>, vector<1x8x32xf32>
    %1 = vector.shape_cast %0 : vector<1x8x32xf32> to vector<8x32xf32>
    %c0_2 = arith.constant 0 : index
    %c0_3 = arith.constant 0 : index
    %c0_4 = arith.constant 0 : index
    %2 = vector.load %arg3[%c0_2, %c0_3, %c0_4] : memref<1x8x32xf32, #tpu.memory_space<vmem>>, vector<1x8x32xf32>
    %3 = vector.shape_cast %2 : vector<1x8x32xf32> to vector<8x32xf32>
    %c0_5 = arith.constant 0 : index
    %c0_6 = arith.constant 0 : index
    %c0_7 = arith.constant 0 : index
    %4 = vector.load %arg4[%c0_5, %c0_6, %c0_7] : memref<1x8x32xf32, #tpu.memory_space<vmem>>, vector<1x8x32xf32>
    %5 = vector.shape_cast %4 : vector<1x8x32xf32> to vector<8x32xf32>
    %cst = arith.constant 0.176776692 : f32
    %6 = vector.broadcast %cst : f32 to vector<8x32xf32>
    %7 = arith.mulf %1, %6 : vector<8x32xf32>
    %cst_8 = arith.constant dense<0.000000e+00> : vector<8x8xf32>
    %8 = tpu.matmul %7, %3, %cst_8 {dimension_numbers = #tpu.dot_dimension_numbers<[1], [1], [0], [0], [0, 0, 1, 0], [], []>} : vector<8x32xf32>, vector<8x32xf32>, vector<8x8xf32> -> vector<8x8xf32>
    %cst_9 = arith.constant dense<0xFF800000> : vector<8xf32>
    %9 = vector.multi_reduction <maximumf>, %8, %cst_9 [1] : vector<8x8xf32> to vector<8xf32>
    %10 = vector.shape_cast %9 : vector<8xf32> to vector<8x1xf32>
    %11 = vector.broadcast %10 : vector<8x1xf32> to vector<8x8xf32>
    %12 = arith.subf %8, %11 : vector<8x8xf32>
    %13 = math.exp %12 : vector<8x8xf32>
    %cst_10 = arith.constant dense<0.000000e+00> : vector<8xf32>
    %14 = vector.multi_reduction <add>, %13, %cst_10 [1] : vector<8x8xf32> to vector<8xf32>
    %15 = vector.shape_cast %14 : vector<8xf32> to vector<8x1xf32>
    %cst_11 = arith.constant 1.000000e+00 : f32
    %16 = vector.broadcast %cst_11 : f32 to vector<8x1xf32>
    %17 = arith.divf %16, %15 : vector<8x1xf32>
    %18 = vector.broadcast %17 : vector<8x1xf32> to vector<8x8xf32>
    %19 = arith.mulf %13, %18 : vector<8x8xf32>
    %cst_12 = arith.constant dense<0.000000e+00> : vector<8x32xf32>
    %20 = tpu.matmul %19, %5, %cst_12 {dimension_numbers = #tpu.dot_dimension_numbers<[1], [0], [0], [1], [0, 0, 1, 1], [], []>} : vector<8x8xf32>, vector<8x32xf32>, vector<8x32xf32> -> vector<8x32xf32>
    %c0_13 = arith.constant 0 : index
    %c0_14 = arith.constant 0 : index
    %c0_15 = arith.constant 0 : index
    %21 = vector.load %arg6[%c0_13, %c0_14, %c0_15] : memref<1x8x8xf32, #tpu.memory_space<vmem>>, vector<1x8x8xf32>
    %22 = vector.shape_cast %21 : vector<1x8x8xf32> to vector<8x8xf32>
    %23 = vector.shape_cast %19 : vector<8x8xf32> to vector<1x8x8xf32>
    tpu.vector_store %arg6[%c0_13, %c0_14, %c0_15], %23 {strides = array<i32>} : memref<1x8x8xf32, #tpu.memory_space<vmem>>, vector<1x8x8xf32>,
    %c0_16 = arith.constant 0 : index
    %c0_17 = arith.constant 0 : index
    %c0_18 = arith.constant 0 : index
    %24 = vector.load %arg5[%c0_16, %c0_17, %c0_18] : memref<1x8x32xf32, #tpu.memory_space<vmem>>, vector<1x8x32xf32>
    %25 = vector.shape_cast %24 : vector<1x8x32xf32> to vector<8x32xf32>
    %26 = vector.shape_cast %20 : vector<8x32xf32> to vector<1x8x32xf32>
    tpu.vector_store %arg5[%c0_16, %c0_17, %c0_18], %26 {strides = array<i32>} : memref<1x8x32xf32, #tpu.memory_space<vmem>>, vector<1x8x32xf32>,
    return
  }
  func.func @transform_0(%arg0: i32, %arg1: i32) -> (i32, i32, i32) {
    %c0_i32 = arith.constant 0 : i32
    %c0_i32_0 = arith.constant 0 : i32
    return %arg0, %arg1, %c0_i32 : i32, i32, i32
  }
  func.func @transform_1(%arg0: i32, %arg1: i32) -> (i32, i32, i32) {
    %c0_i32 = arith.constant 0 : i32
    %c0_i32_0 = arith.constant 0 : i32
    %c0_i32_1 = arith.constant 0 : i32
    return %arg0, %c0_i32, %c0_i32_0 : i32, i32, i32
  }
  func.func @transform_2(%arg0: i32, %arg1: i32) -> (i32, i32, i32) {
    %c0_i32 = arith.constant 0 : i32
    %c0_i32_0 = arith.constant 0 : i32
    %c0_i32_1 = arith.constant 0 : i32
    return %arg0, %c0_i32, %c0_i32_0 : i32, i32, i32
  }
  func.func @transform_3(%arg0: i32, %arg1: i32) -> (i32, i32, i32) {
    %c0_i32 = arith.constant 0 : i32
    %c0_i32_0 = arith.constant 0 : i32
    return %arg0, %arg1, %c0_i32 : i32, i32, i32
  }
  func.func @transform_4(%arg0: i32, %arg1: i32) -> (i32, i32, i32) {
    %c0_i32 = arith.constant 0 : i32
    %c0_i32_0 = arith.constant 0 : i32
    return %arg0, %arg1, %c0_i32 : i32, i32, i32
  }
}

module attributes {stable_mosaic.version = 11 : i64} {
  func.func @_sdpa_kernel(%arg0: i32, %arg1: i32, %arg2: memref<1x8x32xf32, #tpu.memory_space<vmem>>, %arg3: memref<1x8x32xf32, #tpu.memory_space<vmem>>, %arg4: memref<1x8x32xf32, #tpu.memory_space<vmem>>, %arg5: memref<1x8x32xf32, #tpu.memory_space<vmem>>, %arg6: memref<1x8x8xf32, #tpu.memory_space<vmem>>) attributes {dimension_semantics = [#tpu.dimension_semantics<parallel>, #tpu.dimension_semantics<parallel>], iteration_bounds = array<i64: 2, 1>, scalar_prefetch = 0 : i64, scratch_operands = 0 : i64, tpu.core_type = #tpu.core_type<tc>, window_params = [{transform_indices = @transform_0, window_bounds = array<i64: 1, 8, 32>}, {transform_indices = @transform_1, window_bounds = array<i64: 1, 8, 32>}, {transform_indices = @transform_2, window_bounds = array<i64: 1, 8, 32>}, {transform_indices = @transform_3, window_bounds = array<i64: 1, 8, 32>}, {transform_indices = @transform_4, window_bounds = array<i64: 1, 8, 8>}]} {
    %c0 = arith.constant 0 : index
    %c0_0 = arith.constant 0 : index
    %c0_1 = arith.constant 0 : index
    %0 = vector.load %arg2[%c0, %c0_0, %c0_1] : memref<1x8x32xf32, #tpu.memory_space<vmem>>, vector<1x8x32xf32>
    %1 = vector.shape_cast %0 : vector<1x8x32xf32> to vector<8x32xf32>
    %c0_2 = arith.constant 0 : index
    %c0_3 = arith.constant 0 : index
    %c0_4 = arith.constant 0 : index
    %2 = vector.load %arg3[%c0_2, %c0_3, %c0_4] : memref<1x8x32xf32, #tpu.memory_space<vmem>>, vector<1x8x32xf32>
    %3 = vector.shape_cast %2 : vector<1x8x32xf32> to vector<8x32xf32>
    %c0_5 = arith.constant 0 : index
    %c0_6 = arith.constant 0 : index
    %c0_7 = arith.constant 0 : index
    %4 = vector.load %arg4[%c0_5, %c0_6, %c0_7] : memref<1x8x32xf32, #tpu.memory_space<vmem>>, vector<1x8x32xf32>
    %5 = vector.shape_cast %4 : vector<1x8x32xf32> to vector<8x32xf32>
    %cst = arith.constant 0.176776692 : f32
    %6 = vector.broadcast %cst : f32 to vector<8x32xf32>
    %7 = arith.mulf %1, %6 : vector<8x32xf32>
    %cst_8 = arith.constant dense<0.000000e+00> : vector<8x8xf32>
    %8 = tpu.matmul %7, %3, %cst_8 {dimension_numbers = #tpu.dot_dimension_numbers<[1], [1], [0], [0], [0, 0, 1, 0], [], []>} : vector<8x32xf32>, vector<8x32xf32>, vector<8x8xf32> -> vector<8x8xf32>
    %cst_9 = arith.constant dense<0xFF800000> : vector<8xf32>
    %9 = vector.multi_reduction <maximumf>, %8, %cst_9 [1] : vector<8x8xf32> to vector<8xf32>
    %10 = vector.shape_cast %9 : vector<8xf32> to vector<8x1xf32>
    %11 = vector.broadcast %10 : vector<8x1xf32> to vector<8x8xf32>
    %12 = arith.subf %8, %11 : vector<8x8xf32>
    %13 = math.exp %12 : vector<8x8xf32>
    %cst_10 = arith.constant dense<0.000000e+00> : vector<8xf32>
    %14 = vector.multi_reduction <add>, %13, %cst_10 [1] : vector<8x8xf32> to vector<8xf32>
    %15 = vector.shape_cast %14 : vector<8xf32> to vector<8x1xf32>
    %cst_11 = arith.constant 1.000000e+00 : f32
    %16 = vector.broadcast %cst_11 : f32 to vector<8x1xf32>
    %17 = arith.divf %16, %15 : vector<8x1xf32>
    %18 = vector.broadcast %17 : vector<8x1xf32> to vector<8x8xf32>
    %19 = arith.mulf %13, %18 : vector<8x8xf32>
    %cst_12 = arith.constant dense<0.000000e+00> : vector<8x32xf32>
    %20 = tpu.matmul %19, %5, %cst_12 {dimension_numbers = #tpu.dot_dimension_numbers<[1], [0], [0], [1], [0, 0, 1, 1], [], []>} : vector<8x8xf32>, vector<8x32xf32>, vector<8x32xf32> -> vector<8x32xf32>
    %c0_13 = arith.constant 0 : index
    %c0_14 = arith.constant 0 : index
    %c0_15 = arith.constant 0 : index
    %21 = vector.load %arg6[%c0_13, %c0_14, %c0_15] : memref<1x8x8xf32, #tpu.memory_space<vmem>>, vector<1x8x8xf32>
    %22 = vector.shape_cast %21 : vector<1x8x8xf32> to vector<8x8xf32>
    %23 = vector.shape_cast %19 : vector<8x8xf32> to vector<1x8x8xf32>
    tpu.vector_store %arg6[%c0_13, %c0_14, %c0_15], %23 {strides = array<i32>} : memref<1x8x8xf32, #tpu.memory_space<vmem>>, vector<1x8x8xf32>,
    %c0_16 = arith.constant 0 : index
    %c0_17 = arith.constant 0 : index
    %c0_18 = arith.constant 0 : index
    %24 = vector.load %arg5[%c0_16, %c0_17, %c0_18] : memref<1x8x32xf32, #tpu.memory_space<vmem>>, vector<1x8x32xf32>
    %25 = vector.shape_cast %24 : vector<1x8x32xf32> to vector<8x32xf32>
    %26 = vector.shape_cast %20 : vector<8x32xf32> to vector<1x8x32xf32>
    tpu.vector_store %arg5[%c0_16, %c0_17, %c0_18], %26 {strides = array<i32>} : memref<1x8x32xf32, #tpu.memory_space<vmem>>, vector<1x8x32xf32>,
    return
  }
  func.func @transform_0(%arg0: i32, %arg1: i32) -> (i32, i32, i32) {
    %c0_i32 = arith.constant 0 : i32
    %c0_i32_0 = arith.constant 0 : i32
    return %arg0, %arg1, %c0_i32 : i32, i32, i32
  }
  func.func @transform_1(%arg0: i32, %arg1: i32) -> (i32, i32, i32) {
    %c0_i32 = arith.constant 0 : i32
    %c0_i32_0 = arith.constant 0 : i32
    %c0_i32_1 = arith.constant 0 : i32
    return %arg0, %c0_i32, %c0_i32_0 : i32, i32, i32
  }
  func.func @transform_2(%arg0: i32, %arg1: i32) -> (i32, i32, i32) {
    %c0_i32 = arith.constant 0 : i32
    %c0_i32_0 = arith.constant 0 : i32
    %c0_i32_1 = arith.constant 0 : i32
    return %arg0, %c0_i32, %c0_i32_0 : i32, i32, i32
  }
  func.func @transform_3(%arg0: i32, %arg1: i32) -> (i32, i32, i32) {
    %c0_i32 = arith.constant 0 : i32
    %c0_i32_0 = arith.constant 0 : i32
    return %arg0, %arg1, %c0_i32 : i32, i32, i32
  }
  func.func @transform_4(%arg0: i32, %arg1: i32) -> (i32, i32, i32) {
    %c0_i32 = arith.constant 0 : i32
    %c0_i32_0 = arith.constant 0 : i32
    return %arg0, %arg1, %c0_i32 : i32, i32, i32
  }
}

</mosaic_0001>

<bundles_post_ra>
// kernel: tpu_custom_call.1
= control target key start
LH: loop header
LB: loop body
LE: loop exit
PB: predicated region body
PF: predicated region fallthrough
CT: control target
= control target key end

     0   :  { %10 = vsyncpa [#allocation3], 0  ;;  %s1267_s0 = inlined_call_operand.hbm [shape: f32[2,8,32], index: 0, kind: input, shape index: {}]   ;;  %s1268_s1 = inlined_call_operand.hbm [shape: f32[2,8,32], index: 1, kind: input, shape index: {}]   ;;  %s1269_s2 = inlined_call_operand.hbm [shape: f32[2,8,32], index: 2, kind: input, shape index: {}]   ;;  %s1270_s3 = inlined_call_operand.hbm [shape: f32[2,8,32], index: 3, kind: output, shape index: {0}]   ;;  %s1271_s4 = inlined_call_operand.hbm [shape: f32[2,8,8], index: 4, kind: output, shape index: {1}]  }
   0x1   :  { %12 = vsyncpa [#allocation3 + $0x1], 0 }
   0x2   :  { %13 = vsyncpa [#allocation6], 0 }
   0x3   :  { %14 = vsyncpa [#allocation4], 0 }
   0x4   :  { %16 = vsyncpa [#allocation4 + $0x1], 0 }
   0x5   :  { %17 = vsyncpa [#allocation10], 0 }
   0x6   :  { %19 = vsyncpa [#allocation10 + $0x1], 0  ;;  %s984_s15 = smov 0   ;;  %s986_s16 = smov 0  }
   0x7   :  { %s988_s17 = smov 0   ;;  %s990_s18 = smov 0  }
   0x8   :  { %s992_s19 = smov 0   ;;  %s994_s20 = smov 0  }
   0x9 LB: > { %s621_s21 = sadd.s32 4294967295, %s950_s20   ;;  %s622_s22 = sadd.s32 4294967294, %s950_s20   ;;  %s950_s20 = sphi %s994_s20, %s25_s20   ;;  %s946_s19 = sphi %s992_s19, %s1291_s19   ;;  %s942_s18 = sphi %s990_s18, %s1290_s18   ;;  %s938_s17 = sphi %s988_s17, %s1289_s17   ;;  %s934_s16 = sphi %s986_s16, %s1288_s16   ;;  %s930_s15 = sphi %s984_s15, %s1287_s15  }
   0xa   : > { %p59_p0 = scmp.ne.s32.totalorder %s934_s16, %s930_s15  ;;  %p60_p1 = scmp.eq.s32.totalorder %s621_s21, 0 }
   0xb   : > { %p1016_p2 = scmp.eq.s32.totalorder %s621_s21, 1  ;;  %p143_p3 = scmp.eq.s32.totalorder %s622_s22, 1 }
   0xc   : > { %p1020_p4 = por %p60_p1, %p59_p0  ;;  %p623_p5 = scmp.ge.s32.totalorder %s950_s20, 1 }
   0xd   : > { %s1275_s23 = scalar_select %p1016_p2, 1, 0 }
   0xe   : > { %s1276_s24 = scalar_select %p1020_p4, 1, 0 }
   0xf   : > { %p1025_p6 = por %p143_p3, %p59_p0  ;;  %p178_p7 = scmp.lt.s32.totalorder %s950_s20, 3 }
  0x10   : > { %s1030_s26 = sshll.u32 %s942_s18, 7  ;;  %s952_s5 = smov [#allocation5]  }
  0x11   : > { %s1277_s25 = scalar_select %p1025_p6, 1, 0 }
  0x12   : > { %p1032_p8 = pnand %p623_p5, %p178_p7  ;;  %s1040_s30 = scalar_lea.hbm %s1268_s1, %s1030_s26 }
  0x13   : > { %s193_s6 = sshll.u32 %s952_s5, 4  ;;  %s1049_s9 = scalar_lea.hbm %s1269_s2, %s1030_s26  ;;  %s194_s6 = int_to_ptr.vmem [resolvable:$true] %s193_s6 }
  0x14   : > { %s1278_s27 = scalar_select %p1032_p8, 1, 0 }
  0x15   : > { %p666_p10 = pneg %p1032_p8  ;;  %s953_s11 = smov [#allocation7]  }
  0x16   : > { %s206_s12 = sshll.u32 %s953_s11, 4  ;;  %s742_s13 = scalar_lea.hbm %s1040_s30, 128  ;;  %s1057_s12 = int_to_ptr.vmem [resolvable:$true] %s206_s12 }
  0x17   : > { %p1053_p11 = pnand %p666_p10, %p1020_p4  ;;  %p743_p12 = scmp.ne.s32.totalorder %s1040_s30, %s742_s13 }
  0x18   : > { %s747_s21 = scalar_lea.hbm %s1268_s1, 256  ;;  %p748_p3 = scmp.lt.u32.totalorder %s1040_s30, %s1268_s1 }
  0x19   : > { %p744_p13 = pneg %p1053_p11  ;;  %p749_p5 = scmp.lt.u32.totalorder %s747_s21, %s742_s13 }
  0x1a   : > { %p751_p10 = scmp.lt.u32.totalorder %s742_s13, %s1040_s30 }
  0x1b   : > { %p745_p0 = pnand %p744_p13, %p743_p12  ;;  %p750_p7 = por %p749_p5, %p748_p3 }
  0x1d   : > { %p746_p1 = pneg %p745_p0  ;;  %p752_p9 = por %p751_p10, %p750_p7 }
  0x1f   : > { %p753_p6 = pnand %p752_p9, %p746_p1 }
  0x21   : > { %756 = shalt.err (!%p753_p6)
}
  0x22   : > { %s757_s29 = scalar_lea.vmem %s194_s6, 128  ;;  %p765_p8 = scmp.lt.s32.totalorder %s194_s6, %s194_s6 }
  0x23   : > { %p758_p4 = scmp.ne.s32.totalorder %s194_s6, %s757_s29  ;;  %p766_p2 = scmp.lt.s32.totalorder %s757_s29, %s757_s29 }
  0x25   : > { %p760_p12 = pnand %p758_p4, %p744_p13  ;;  %p767_p3 = por %p766_p2, %p765_p8 }
  0x27   : > { %p761_p0 = pneg %p760_p12 }
  0x29   : > { %p768_p5 = pnand %p767_p3, %p761_p0 }
  0x2b   : > { %771 = shalt.err (!%p768_p5)
}
  0x2c   : > { %669 = dma.hbm_to_vmem [thread:$0]  (!%p1053_p11), %s1040_s30, 128, %s194_s6, [#allocation6]  }
  0x2d   : > { %s772_s5 = scalar_lea.hbm %s1049_s9, 128  ;;  %s777_s11 = scalar_lea.hbm %s1269_s2, 256 }
  0x2e   : > { %p773_p6 = scmp.ne.s32.totalorder %s1049_s9, %s772_s5  ;;  %p778_p2 = scmp.lt.u32.totalorder %s1049_s9, %s1269_s2 }
  0x2f   : > { %p779_p8 = scmp.lt.u32.totalorder %s777_s11, %s772_s5  ;;  %p781_p7 = scmp.lt.u32.totalorder %s772_s5, %s1049_s9 }
  0x30   : > { %p775_p4 = pnand %p773_p6, %p744_p13 }
  0x31   : > { %p780_p1 = por %p779_p8, %p778_p2 }
  0x32   : > { %p776_p9 = pneg %p775_p4 }
  0x33   : > { %p782_p10 = por %p781_p7, %p780_p1 }
  0x35   : > { %p783_p12 = pnand %p782_p10, %p776_p9 }
  0x37   : > { %786 = shalt.err (!%p783_p12)
}
  0x38   : > { %s787_s30 = scalar_lea.vmem %s1057_s12, 128  ;;  %p795_p6 = scmp.lt.s32.totalorder %s1057_s12, %s1057_s12 }
  0x39   : > { %p788_p0 = scmp.ne.s32.totalorder %s1057_s12, %s787_s30  ;;  %p796_p4 = scmp.lt.s32.totalorder %s787_s30, %s787_s30 }
  0x3b   : > { %p790_p3 = pnand %p788_p0, %p744_p13  ;;  %p797_p2 = por %p796_p4, %p795_p6 }
  0x3d   : > { %p791_p5 = pneg %p790_p3 }
  0x3f   : > { %p798_p8 = pnand %p797_p2, %p791_p5 }
  0x41   : > { %801 = shalt.err (!%p798_p8)
}
  0x42   : > { %672 = dma.hbm_to_vmem [thread:$0]  (!%p1053_p11), %s1049_s9, 128, %s1057_s12, [#allocation6]  }
  0x43   : > { %s37_s6 = sadd.s32 1, %s946_s19  ;;  %s46_s18 = sadd.s32 1, %s938_s17 }
  0x44   : > { %p39_p13 = scmp.ge.s32.totalorder %s37_s6, 2  ;;  %p53_p9 = scmp.ne.s32.totalorder %s938_s17, %s934_s16 }
  0x45   : > { %p54_p1 = scmp.eq.s32.totalorder %s950_s20, 0  ;;  %p684_p7 = scmp.lt.s32.totalorder %s950_s20, 2 }
  0x46   : > { %s1293_s6 = smov (%p39_p13, %s37_s6), 0  ;;  %p1280_p12 = scmp.ne.s32.totalorder %s1275_s23, 0 }
  0x47   : > { %p55_p10 = por %p54_p1, %p53_p9  ;;  %s41_s21 = ssub.s32 %s946_s19, %s1293_s6 }
  0x48   : > { %p1114_p0 = por %p1280_p12, %p53_p9  ;;  %s217_s22 = sand.u32 1, %s938_s17  }
  0x49   : > { %p44_p3 = scmp.eq.s32.totalorder %s41_s21, 0  ;;  %s627_s9 = sshll.u32 %s217_s22, 3 }
  0x4a   : > { %s628_s12 = sshll.u32 %s946_s19, 7  ;;  %s221_s23 = scalar_lea.vmem [#allocation2], %s627_s9 }
  0x4b   : > { %s1123_s28 = scalar_select %p44_p3, %s938_s17, %s46_s18  }
  0x4c   : > { %s1128_s7 = scalar_lea.hbm %s1267_s0, %s628_s12  ;;  %s229_s8 = sshll.u32 %s221_s23, 4  ;;  %s1136_s8 = int_to_ptr.vmem [resolvable:$true] %s229_s8 }
  0x4d   : > { %p1132_p11 = pnand %p684_p7, %p55_p10  ;;  %s218_s13 = scalar_lea.sflag [#allocation3], %s217_s22 }
  0x4e   : > { %s802_s14 = scalar_lea.hbm %s1128_s7, 128  ;;  %s807_s21 = scalar_lea.hbm %s1267_s0, 256 }
  0x4f   : > { %p803_p5 = scmp.ne.s32.totalorder %s1128_s7, %s802_s14  ;;  %p804_p6 = pneg %p1132_p11 }
  0x50   : > { %p808_p8 = scmp.lt.u32.totalorder %s1128_s7, %s1267_s0  ;;  %p809_p13 = scmp.lt.u32.totalorder %s807_s21, %s802_s14 }
  0x51   : > { %p805_p4 = pnand %p804_p6, %p803_p5  ;;  %p811_p1 = scmp.lt.u32.totalorder %s802_s14, %s1128_s7 }
  0x52   : > { %p810_p9 = por %p809_p13, %p808_p8 }
  0x53   : > { %p806_p2 = pneg %p805_p4 }
  0x54   : > { %p812_p7 = por %p811_p1, %p810_p9 }
  0x56   : > { %p813_p10 = pnand %p812_p7, %p806_p2 }
  0x58   : > { %816 = shalt.err (!%p813_p10)
}
  0x59   : > { %s817_s22 = scalar_lea.vmem %s1136_s8, 128  ;;  %s954_s29 = smov [#allocation2]  }
  0x5a   : > { %p818_p12 = scmp.ne.s32.totalorder %s1136_s8, %s817_s22  ;;  %s822_s5 = sshll.u32 %s954_s29, 4  ;;  %s823_s5 = int_to_ptr.vmem [resolvable:$false] %s822_s5 }
  0x5b   : > { %s824_s23 = scalar_lea.vmem %s823_s5, 256  ;;  %p825_p4 = scmp.lt.s32.totalorder %s1136_s8, %s823_s5 }
  0x5c   : > { %p820_p3 = pnand %p818_p12, %p804_p6  ;;  %p826_p8 = scmp.lt.s32.totalorder %s824_s23, %s817_s22 }
  0x5e   : > { %p821_p5 = pneg %p820_p3  ;;  %p827_p13 = por %p826_p8, %p825_p4 }
  0x60   : > { %p828_p9 = pnand %p827_p13, %p821_p5 }
  0x62   : > { %831 = shalt.err (!%p828_p9)
}
  0x63   : > { %676 = dma.hbm_to_vmem [thread:$0]  (!%p1132_p11), %s1128_s7, 128, %s1136_s8, %s218_s13  }
  0x64   : > { %p1283_p2 = scmp.ne.s32.totalorder %s1278_s27, 0 }
  0x65   : > { %s1166_s14 = sand.u32 (!%p1283_p2), 1, %s934_s16   ;;  %p1284_p6 = scmp.ne.s32.totalorder (!%p1283_p2), %s1276_s24, 0 }
  0x66   : > { %238 = sbr.rel (%p1283_p2) target bundleno = 870 (0x366), region = 32  ;;  %s1169_s30 = sshll.u32 (!%p1283_p2), %s1166_s14, 3 }
  0x67   : > { %s241_s18 = scalar_lea.sflag (!%p1283_p2), [#allocation3], %s1166_s14  ;;  %s244_s21 = scalar_lea.vmem (!%p1283_p2), [#allocation2], %s1169_s30 }
  0x6d   : > { %913 = dma.done.wait (%p1284_p6), %s241_s18, 128  }
  0x6e   : > { %915 = vsyncadd (%p1284_p6), %s241_s18, 4294967168 }
  0x6f   : > { %917 = dma.done.wait (%p1284_p6), [#allocation6], 256  }
  0x70   : > { %919 = vsyncadd (%p1284_p6), [#allocation6], 4294967040  ;;  %v955_v0 = vmov 0.0   ;;  %vm956_vm0 = vmmov 0   ;;  %vm286_vm1 = vcmask 261120   ;;  %v283_v1 = vld [vmem:[#allocation5] sm:$0xff]  ;;  %s1192_s11 = scalar_lea.hbm %s1271_s4, %s1030_s26 }
  0x71   : > { %646 = vmatprep.subr.mxu0 %v955_v0  ;;  %648 = vmatprep.mubr.msk.f32.mxu0 %vm956_vm0, %v955_v0  ;;  %v282_v2 = vld [vmem:[%s244_s21] sm:$0xff]  ;;  %vm363_vm2 = vcmask 64512   ;;  %v284_v12 = vld [vmem:[#allocation7] sm:$0xff]  ;;  %s281_s24 = scalar_lea.vmem [#allocation9], %s1169_s30  ;;  %s457_s13 = scalar_lea.sflag [#allocation10], %s1166_s14 }
  0x72   : > { %651 = vmatprep.subr.mxu1 %v955_v0  ;;  %653 = vmatprep.mubr.msk.f32.mxu1 %vm956_vm0, %v955_v0  ;;  %v285_v3 = vmul.f32 0.17677669, %v282_v2  ;;  %s485_s27 = sshll.u32 %s281_s24, 4  ;;  %s957_s12 = smov [#allocation9]   ;;  %s486_s27 = int_to_ptr.vmem [resolvable:$true] %s485_s27 }
  0x73   : > { %647 = vmatpush3.xpose.msk.msra.mxu0 %vm286_vm1, %v283_v1  ;;  %652 = vmatpush3.msra.mxu1 %v284_v12  ;;  %s832_s9 = scalar_lea.vmem %s486_s27, 128  ;;  %s836_s22 = sshll.u32 %s957_s12, 4  ;;  %s837_s22 = int_to_ptr.vmem [resolvable:$false] %s836_s22 }
  0x74   : > { %p833_p11 = scmp.ne.s32.totalorder %s486_s27, %s832_s9  ;;  %s838_s29 = scalar_lea.vmem %s837_s22, 256 }
  0x75   : > { %p839_p10 = scmp.lt.s32.totalorder %s486_s27, %s837_s22  ;;  %p840_p12 = scmp.lt.s32.totalorder %s838_s29, %s832_s9 }
  0x76   : > { %649 = vmatmul.mubr.msk.f32.vlgmr.msra.gmra.mrb[0].mxu0 %vm286_vm1, %v285_v3  ;;  %p834_p1 = pnand %p833_p11, %p1114_p0 }
  0x77   : > { %p841_p3 = por %p840_p12, %p839_p10 }
  0x78   : > { %p835_p7 = pneg %p834_p1 }
  0x7a   : > { %p842_p5 = pnand %p841_p3, %p835_p7 }
 0x149   : > { %v359_v4 = vpop.f32.mrb[0].mxu0 }
 0x14a   : > { %v650_v5 = vpop.f32.mrb[1].mxu0  ;;  %v364_v6 = vsel %vm363_vm2, %v359_v4, -inf }
 0x14b   : > { %365 = vmax.xlane.f32.xlu0 %v364_v6 }
 0x1d8   : > { %v366_v7 = vpop.xlane.xlu0 %365 }
 0x1d9   : > { %v367_v8 = vsub.f32 %v359_v4, %v366_v7 }
 0x1db   : > { %v368_v9 = vmul.f32 1.442695, %v367_v8 }
 0x1dd   : > { %738 = vpow2.f32 %v368_v9 }
 0x1e7   : > { %v739_v10 = vpop.eup %738 }
 0x1e8   : > { %v370_v11 = vsel %vm363_vm2, %v739_v10, 0.0 }
 0x1e9   : > { %371 = vadd.xlane.f32.xlu0 %v370_v11 }
 0x276   : > { %v372_v13 = vpop.xlane.xlu0 %371 }
 0x277   : > { %740 = vrcp.f32 %v372_v13 }
 0x281   : > { %v741_v14 = vpop.eup %740 }
 0x282   : > { %v375_v15 = vmul.f32 %v741_v14, %v739_v10 }
 0x284   : > { %654 = vmatmul.mubr.msk.f32.vlgmr.msra.gmra.mrb[0].mxu1 %vm363_vm2, %v375_v15  ;;  %449 = vst.msk [vmem:[%s281_s24] sm:$0xff] %vm363_vm2, %v375_v15 }
 0x285   : > { %845 = shalt.err (!%p842_p5)
}
 0x286   : > { %s846_s5 = scalar_lea.hbm %s1192_s11, 128  ;;  %s850_s21 = scalar_lea.hbm %s1271_s4, 256 }
 0x287   : > { %p847_p4 = scmp.ne.s32.totalorder %s1192_s11, %s846_s5  ;;  %p851_p9 = scmp.lt.u32.totalorder %s1192_s11, %s1271_s4 }
 0x288   : > { %p852_p2 = scmp.lt.u32.totalorder %s850_s21, %s846_s5  ;;  %p854_p11 = scmp.lt.u32.totalorder %s846_s5, %s1192_s11 }
 0x289   : > { %p848_p8 = pnand %p847_p4, %p1114_p0 }
 0x28a   : > { %p853_p6 = por %p852_p2, %p851_p9 }
 0x28b   : > { %p849_p13 = pneg %p848_p8 }
 0x28c   : > { %p855_p1 = por %p854_p11, %p853_p6 }
 0x28e   : > { %p856_p7 = pnand %p855_p1, %p849_p13 }
 0x290   : > { %859 = shalt.err (!%p856_p7)
}
 0x291   : > { %663 = dma.vmem_to_hbm [thread:$0]  (%p1114_p0), %s486_s27, 128, %s1192_s11, %s457_s13  }
 0x292   : > { %s274_s8 = scalar_lea.vmem [#allocation8], %s1169_s30  ;;  %s1217_s29 = scalar_lea.hbm %s1270_s3, %s1030_s26 }
 0x293   : > { %s471_s9 = sshll.u32 %s274_s8, 4  ;;  %s452_s5 = scalar_lea.sflag [#allocation4], %s1166_s14  ;;  %s1219_s9 = int_to_ptr.vmem [resolvable:$true] %s471_s9 }
 0x294   : > { %s860_s23 = scalar_lea.vmem %s1219_s9, 128  ;;  %s958_s30 = smov [#allocation8]  }
 0x295   : > { %p861_p10 = scmp.ne.s32.totalorder %s1219_s9, %s860_s23  ;;  %s864_s27 = sshll.u32 %s958_s30, 4  ;;  %s865_s27 = int_to_ptr.vmem [resolvable:$false] %s864_s27 }
 0x296   : > { %s866_s26 = scalar_lea.vmem %s865_s27, 256  ;;  %p867_p5 = scmp.lt.s32.totalorder %s1219_s9, %s865_s27 }
 0x297   : > { %p862_p12 = pnand %p861_p10, %p1114_p0  ;;  %p868_p4 = scmp.lt.s32.totalorder %s866_s26, %s860_s23 }
 0x299   : > { %p863_p3 = pneg %p862_p12  ;;  %p869_p8 = por %p868_p4, %p867_p5 }
 0x29b   : > { %p870_p13 = pnand %p869_p8, %p863_p3 }
 0x357   : > { %v445_v16 = vpop.f32.mrb[0].mxu1 }
 0x358   : > { %450 = vst.msk [vmem:[%s274_s8] sm:$0xff] %vm286_vm1, %v445_v16  ;;  %v655_v17 = vpop.f32.mrb[1].mxu1 }
 0x359   : > { %873 = shalt.err (!%p870_p13)
}
 0x35a   : > { %s874_s14 = scalar_lea.hbm %s1217_s29, 128  ;;  %s878_s18 = scalar_lea.hbm %s1270_s3, 256 }
 0x35b   : > { %p875_p9 = scmp.ne.s32.totalorder %s1217_s29, %s874_s14  ;;  %p879_p11 = scmp.lt.u32.totalorder %s1217_s29, %s1270_s3 }
 0x35c   : > { %p880_p1 = scmp.lt.u32.totalorder %s878_s18, %s874_s14  ;;  %p882_p10 = scmp.lt.u32.totalorder %s874_s14, %s1217_s29 }
 0x35d   : > { %p876_p2 = pnand %p875_p9, %p1114_p0 }
 0x35e   : > { %p881_p7 = por %p880_p1, %p879_p11 }
 0x35f   : > { %p877_p6 = pneg %p876_p2 }
 0x360   : > { %p883_p12 = por %p882_p10, %p881_p7 }
 0x362   : > { %p884_p3 = pnand %p883_p12, %p877_p6 }
 0x364   : > { %887 = shalt.err (!%p884_p3)
}
 0x365   : > { %662 = dma.vmem_to_hbm [thread:$0]  (%p1114_p0), %s1219_s9, 128, %s1217_s29, %s452_s5  }
 0x366 PF: > { %s497_s7 = sand.u32 1, %s930_s15   ;;  %p1285_p5 = scmp.ne.s32.totalorder %s1277_s25, 0 }
 0x367   : > { %p1286_p4 = scmp.ge.s32.totalorder %s950_s20, 2  ;;  %s498_s8 = scalar_lea.sflag [#allocation4], %s497_s7 }
 0x369   : > { %p678_p8 = pnand %p1286_p4, %p1285_p5 }
 0x36b   : > { %921 = dma.done.wait (!%p678_p8), %s498_s8, 128  }
 0x36c   : > { %923 = vsyncadd (!%p678_p8), %s498_s8, 4294967168  ;;  %s507_s12 = scalar_lea.sflag [#allocation10], %s497_s7 }
 0x36d   : > { %925 = dma.done.wait (!%p678_p8), %s507_s12, 128  }
 0x36e   : > { %927 = vsyncadd (!%p678_p8), %s507_s12, 4294967168  ;;  %s25_s20 = sadd.s32 1, %s950_s20   ;;  %s1287_s15 = smov %s934_s16 }
 0x36f   : > { %p22_p13 = scmp.ge.s32.totalorder %s25_s20, 4   ;;  %s1288_s16 = smov %s938_s17 }
 0x370   : > { %s1289_s17 = smov %s1123_s28  ;;  %s1290_s18 = smov %s946_s19 }
 0x371   : > { %s1291_s19 = smov %s1293_s6  ;;  %24 = sbr.rel (!%p22_p13) target bundleno = 9 (0x9), region = 104 }
 0x378   :  { %512 = vsyncpa [#allocation3], 1 }
 0x379   :  { %514 = vsyncpa [#allocation3 + $0x1], 1 }
 0x37a   :  { %515 = vsyncpa [#allocation6], 1 }
 0x37b   :  { %516 = vsyncpa [#allocation4], 1 }
 0x37c   :  { %518 = vsyncpa [#allocation4 + $0x1], 1 }
 0x37d   :  { %519 = vsyncpa [#allocation10], 1 }
 0x37e   :  { %521 = vsyncpa [#allocation10 + $0x1], 1 }

// kernel: tpu_custom_call.1
= control target key start
LH: loop header
LB: loop body
LE: loop exit
PB: predicated region body
PF: predicated region fallthrough
CT: control target
= control target key end

     0   :  { %s1336_s0 = inlined_call_operand.hbm [shape: f32[2,8,32], index: 0, kind: input, shape index: {}]   ;;  %s1337_s1 = inlined_call_operand.hbm [shape: f32[2,8,32], index: 1, kind: input, shape index: {}]   ;;  %s1338_s2 = inlined_call_operand.hbm [shape: f32[2,8,32], index: 2, kind: input, shape index: {}]   ;;  %s1339_s3 = inlined_call_operand.hbm [shape: f32[2,8,32], index: 3, kind: output, shape index: {0}]   ;;  %s1340_s4 = inlined_call_operand.hbm [shape: f32[2,8,8], index: 4, kind: output, shape index: {1}]  }
   0x1   :  { %1349 = sst [smem:[#allocation19_spill]] %s1337_s1 }
   0x2   :  { %10 = vsyncpa [#allocation3], 0 }
   0x3   :  { %12 = vsyncpa [#allocation3 + $0x1], 0 }
   0x4   :  { %13 = vsyncpa [#allocation6], 0 }
   0x5   :  { %15 = vsyncpa [#allocation6 + $0x1], 0 }
   0x6   :  { %16 = vsyncpa [#allocation4], 0 }
   0x7   :  { %18 = vsyncpa [#allocation4 + $0x1], 0 }
   0x8   :  { %19 = vsyncpa [#allocation10], 0 }
   0x9   :  { %21 = vsyncpa [#allocation10 + $0x1], 0  ;;  %s1037_s15 = smov 0   ;;  %s1039_s16 = smov 0  }
   0xa   :  { %s1041_s17 = smov 0   ;;  %s1043_s18 = smov 0  }
   0xb   :  { %s1045_s19 = smov 0   ;;  %s1047_s20 = smov 0  }
   0xc LB: > { %1350 = sst [smem:[#allocation15_spill]] %s999_s19  ;;  %s1068_s21 = sadd.s32 4294967295, %s1003_s20   ;;  %s1003_s20 = sphi %s1047_s20, %s27_s20   ;;  %s999_s19 = sphi %s1045_s19, %s1374_s19   ;;  %s995_s18 = sphi %s1043_s18, %s1373_s18   ;;  %s991_s17 = sphi %s1041_s17, %s1377_s17   ;;  %s987_s16 = sphi %s1039_s16, %s1376_s16   ;;  %s983_s15 = sphi %s1037_s15, %s1375_s15  }
   0xd   : > { %1351 = sst [smem:[#allocation16_spill]] %s1003_s20  ;;  %s674_s22 = sadd.s32 4294967294, %s1003_s20  }
   0xe   : > { %s39_s23 = sadd.s32 1, %s999_s19  ;;  %s48_s24 = sadd.s32 1, %s991_s17 }
   0xf   : > { %p41_p0 = scmp.ge.s32.totalorder %s39_s23, 2  ;;  %p55_p1 = scmp.ne.s32.totalorder %s991_s17, %s987_s16 }
  0x10   : > { %p56_p2 = scmp.eq.s32.totalorder %s1003_s20, 0  ;;  %p61_p3 = scmp.ne.s32.totalorder %s987_s16, %s983_s15 }
  0x11   : > { %s1379_s23 = smov (%p41_p0, %s39_s23), 0  ;;  %p62_p5 = scmp.eq.s32.totalorder %s1068_s21, 0 }
  0x12   : > { %1352 = sst [smem:[#allocation17_spill]] %s1379_s23  ;;  %p1080_p4 = por %p56_p2, %p55_p1 }
  0x13   : > { %s43_s26 = ssub.s32 %s999_s19, %s1379_s23  ;;  %p139_p6 = scmp.eq.s32.totalorder %s1068_s21, 1 }
  0x14   : > { %p46_p7 = scmp.eq.s32.totalorder %s43_s26, 0  ;;  %p1088_p8 = por %p62_p5, %p61_p3 }
  0x15   : > { %p1092_p9 = por %p139_p6, %p55_p1  ;;  %p145_p10 = scmp.eq.s32.totalorder %s674_s22, 1 }
  0x16   : > { %s1354_s27 = scalar_select %p1088_p8, 1, 0 }
  0x17   : > { %s1355_s28 = scalar_select %p1092_p9, 1, 0 }
  0x18   : > { %s1097_s29 = scalar_select %p46_p7, %s991_s17, %s48_s24  }
  0x19   : > { %p1099_p11 = por %p145_p10, %p61_p3  ;;  %p739_p13 = scmp.lt.s32.totalorder %s1003_s20, 2 }
  0x1a   : > { %1356 = sst [smem:[#allocation18_spill]] %s1097_s29  ;;  %s1341_s5 = sand.u32 1, %s991_s17  }
  0x1b   : > { %s1357_s30 = scalar_select %p1099_p11, 1, 0 }
  0x1c   : > { %s1108_s6 = sshll.u32 %s1341_s5, 3  ;;  %s1111_s7 = sshll.u32 %s999_s19, 7 }
  0x1d   : > { %p1115_p0 = pnand %p739_p13, %p1080_p4  ;;  %s212_s9 = sand.u32 1, %s1003_s20  }
  0x1e   : > { %s1359_s1 = sld [smem:[#allocation19_spill]]  ;;  %s216_s13 = scalar_lea.vmem [#allocation5], %s1108_s6 }
  0x1f   : > { %s1358_s8 = scalar_select %p1115_p0, 1, 0 }
  0x20   : > { %s223_s14 = sshll.u32 %s216_s13, 4  ;;  %s1131_s22 = scalar_lea.sflag [#allocation6], %s212_s9  ;;  %s1128_s14 = int_to_ptr.vmem [resolvable:$true] %s223_s14 }
  0x21   : > { %p1137_p4 = pneg %p1115_p0 }
  0x24   : > { %s1124_s12 = scalar_lea.hbm %s1359_s1, %s1111_s7  ;;  %s800_s11 = scalar_lea.hbm %s1359_s1, 256 }
  0x25   : > { %s795_s24 = scalar_lea.hbm %s1124_s12, 128  ;;  %p801_p7 = scmp.lt.u32.totalorder %s1124_s12, %s1359_s1 }
  0x26   : > { %p796_p3 = scmp.ne.s32.totalorder %s1124_s12, %s795_s24  ;;  %p802_p10 = scmp.lt.u32.totalorder %s800_s11, %s795_s24 }
  0x27   : > { %p804_p12 = scmp.lt.u32.totalorder %s795_s24, %s1124_s12 }
  0x28   : > { %p798_p5 = pnand %p1137_p4, %p796_p3  ;;  %p803_p13 = por %p802_p10, %p801_p7 }
  0x2a   : > { %p799_p6 = pneg %p798_p5  ;;  %p805_p1 = por %p804_p12, %p803_p13 }
  0x2c   : > { %p806_p2 = pnand %p805_p1, %p799_p6 }
  0x2e   : > { %809 = shalt.err (!%p806_p2)
}
  0x2f   : > { %s810_s9 = scalar_lea.vmem %s1128_s14, 128  ;;  %s1005_s26 = smov [#allocation5]  }
  0x30   : > { %p811_p3 = scmp.ne.s32.totalorder %s1128_s14, %s810_s9  ;;  %s815_s10 = sshll.u32 %s1005_s26, 4  ;;  %s816_s10 = int_to_ptr.vmem [resolvable:$false] %s815_s10 }
  0x31   : > { %s817_s5 = scalar_lea.vmem %s816_s10, 256  ;;  %p818_p9 = scmp.lt.s32.totalorder %s1128_s14, %s816_s10 }
  0x32   : > { %p813_p5 = pnand %p811_p3, %p1137_p4  ;;  %p819_p8 = scmp.lt.s32.totalorder %s817_s5, %s810_s9 }
  0x34   : > { %p814_p11 = pneg %p813_p5  ;;  %p820_p7 = por %p819_p8, %p818_p9 }
  0x36   : > { %p821_p10 = pnand %p820_p7, %p814_p11 }
  0x38   : > { %824 = shalt.err (!%p821_p10)
}
  0x39   : > { %728 = dma.hbm_to_vmem [thread:$0]  (!%p1115_p0), %s1124_s12, 128, %s1128_s14, %s1131_s22  }
  0x3a   : > { %p1361_p12 = scmp.lt.s32.totalorder %s1003_s20, 3  ;;  %p1362_p1 = scmp.ge.s32.totalorder %s1003_s20, 1 }
  0x3b   : > { %s1173_s9 = scalar_lea.hbm %s1336_s0, %s1111_s7  ;;  %s197_s26 = scalar_lea.vmem [#allocation2], %s1108_s6 }
  0x3c   : > { %p1165_p2 = pnand %p1362_p1, %p1361_p12  ;;  %s205_s10 = sshll.u32 %s197_s26, 4  ;;  %s1176_s10 = int_to_ptr.vmem [resolvable:$true] %s205_s10 }
  0x3d   : > { %s1182_s5 = scalar_lea.hbm %s1338_s2, %s1111_s7  ;;  %s1364_s1 = sand.u32 1, %s991_s17  }
  0x3e   : > { %s1363_s24 = scalar_select %p1165_p2, 1, 0 }
  0x3f   : > { %s194_s23 = scalar_lea.sflag [#allocation3], %s1364_s1  ;;  %s825_s19 = scalar_lea.hbm %s1173_s9, 128 }
  0x40   : > { %p826_p8 = scmp.ne.s32.totalorder %s1173_s9, %s825_s19  ;;  %s830_s29 = scalar_lea.hbm %s1336_s0, 256 }
  0x41   : > { %p831_p6 = scmp.lt.u32.totalorder %s1173_s9, %s1336_s0  ;;  %p832_p13 = scmp.lt.u32.totalorder %s830_s29, %s825_s19 }
  0x42   : > { %p828_p9 = pnand %p826_p8, %p1137_p4  ;;  %p834_p5 = scmp.lt.u32.totalorder %s825_s19, %s1173_s9 }
  0x43   : > { %p833_p3 = por %p832_p13, %p831_p6 }
  0x44   : > { %p829_p11 = pneg %p828_p9 }
  0x45   : > { %p835_p7 = por %p834_p5, %p833_p3 }
  0x47   : > { %p836_p10 = pnand %p835_p7, %p829_p11 }
  0x49   : > { %839 = shalt.err (!%p836_p10)
}
  0x4a   : > { %s840_s1 = scalar_lea.vmem %s1176_s10, 128  ;;  %s1006_s7 = smov [#allocation2]  }
  0x4b   : > { %p841_p12 = scmp.ne.s32.totalorder %s1176_s10, %s840_s1  ;;  %s845_s12 = sshll.u32 %s1006_s7, 4  ;;  %s846_s12 = int_to_ptr.vmem [resolvable:$false] %s845_s12 }
  0x4c   : > { %s847_s20 = scalar_lea.vmem %s846_s12, 256  ;;  %p848_p9 = scmp.lt.s32.totalorder %s1176_s10, %s846_s12 }
  0x4d   : > { %p843_p1 = pnand %p841_p12, %p1137_p4  ;;  %p849_p2 = scmp.lt.s32.totalorder %s847_s20, %s840_s1 }
  0x4f   : > { %p844_p8 = pneg %p843_p1  ;;  %p850_p6 = por %p849_p2, %p848_p9 }
  0x51   : > { %p851_p13 = pnand %p850_p6, %p844_p8 }
  0x53   : > { %854 = shalt.err (!%p851_p13)
}
  0x54   : > { %725 = dma.hbm_to_vmem [thread:$0]  (!%p1115_p0), %s1173_s9, 128, %s1176_s10, %s194_s23  }
  0x55   : > { %s234_s19 = scalar_lea.vmem [#allocation7], %s1108_s6  ;;  %s855_s14 = scalar_lea.hbm %s1182_s5, 128 }
  0x56   : > { %s241_s29 = sshll.u32 %s234_s19, 4  ;;  %p856_p11 = scmp.ne.s32.totalorder %s1182_s5, %s855_s14  ;;  %s242_s29 = int_to_ptr.vmem [resolvable:$true] %s241_s29 }
  0x57   : > { %s860_s26 = scalar_lea.hbm %s1338_s2, 256  ;;  %p861_p5 = scmp.lt.u32.totalorder %s1182_s5, %s1338_s2 }
  0x58   : > { %p858_p2 = pnand %p856_p11, %p1137_p4  ;;  %p862_p7 = scmp.lt.u32.totalorder %s860_s26, %s855_s14 }
  0x59   : > { %p864_p12 = scmp.lt.u32.totalorder %s855_s14, %s1182_s5 }
  0x5a   : > { %p859_p3 = pneg %p858_p2  ;;  %p863_p10 = por %p862_p7, %p861_p5 }
  0x5c   : > { %p865_p1 = por %p864_p12, %p863_p10 }
  0x5e   : > { %p866_p8 = pnand %p865_p1, %p859_p3 }
  0x60   : > { %869 = shalt.err (!%p866_p8)
}
  0x61   : > { %s870_s23 = scalar_lea.vmem %s242_s29, 128  ;;  %s1007_s6 = smov [#allocation7]  }
  0x62   : > { %p871_p9 = scmp.ne.s32.totalorder %s242_s29, %s870_s23  ;;  %s875_s9 = sshll.u32 %s1007_s6, 4  ;;  %s876_s9 = int_to_ptr.vmem [resolvable:$false] %s875_s9 }
  0x63   : > { %s877_s10 = scalar_lea.vmem %s876_s9, 256  ;;  %p878_p11 = scmp.lt.s32.totalorder %s242_s29, %s876_s9 }
  0x64   : > { %p873_p6 = pnand %p871_p9, %p1137_p4  ;;  %p879_p2 = scmp.lt.s32.totalorder %s877_s10, %s870_s23 }
  0x66   : > { %p874_p13 = pneg %p873_p6  ;;  %p880_p0 = por %p879_p2, %p878_p11 }
  0x68   : > { %p881_p5 = pnand %p880_p0, %p874_p13 }
  0x6a   : > { %884 = shalt.err (!%p881_p5)
}
  0x6b   : > { %p1365_p7 = scmp.ne.s32.totalorder %s1358_s8, 0  ;;  %p1366_p3 = scmp.ne.s32.totalorder %s1363_s24, 0 }
  0x6c   : > { %s1229_s25 = sand.u32 (!%p1366_p3), 1, %s987_s16   ;;  %p1367_p0 = scmp.ne.s32.totalorder (!%p1366_p3), %s1354_s27, 0 }
  0x6d   : > { %731 = dma.hbm_to_vmem [thread:$0]  (!%p1365_p7), %s1182_s5, 128, %s242_s29, %s1131_s22  }
  0x6e   : > { %250 = sbr.rel (%p1366_p3) target bundleno = 879 (0x36f), region = 32  ;;  %s1232_s12 = sshll.u32 (!%p1366_p3), %s1229_s25, 3 }
  0x6f   : > { %s253_s20 = scalar_lea.sflag (!%p1366_p3), [#allocation3], %s1229_s25  ;;  %s256_s19 = scalar_lea.vmem (!%p1366_p3), [#allocation2], %s1232_s12 }
  0x75   : > { %966 = dma.done.wait (%p1367_p0), %s253_s20, 128  }
  0x76   : > { %968 = vsyncadd (%p1367_p0), %s253_s20, 4294967168  ;;  %s261_s8 = sand.u32 1, %s1068_s21   ;;  %s265_s24 = scalar_lea.vmem [#allocation5], %s1232_s12 }
  0x77   : > { %s262_s22 = scalar_lea.sflag [#allocation6], %s261_s8 }
  0x78   : > { %970 = dma.done.wait (%p1367_p0), %s262_s22, 256  }
  0x79   : > { %972 = vsyncadd (%p1367_p0), %s262_s22, 4294967040  ;;  %v1008_v0 = vmov 0.0   ;;  %vm1009_vm0 = vmmov 0   ;;  %vm318_vm1 = vcmask 261120   ;;  %v315_v1 = vld [vmem:[%s265_s24] sm:$0xff]  ;;  %v314_v2 = vld [vmem:[%s256_s19] sm:$0xff] }
  0x7a   : > { %702 = vmatprep.subr.mxu0 %v1008_v0  ;;  %704 = vmatprep.mubr.msk.f32.mxu0 %vm1009_vm0, %v1008_v0  ;;  %v317_v3 = vmul.f32 0.17677669, %v314_v2  ;;  %vm395_vm2 = vcmask 64512   ;;  %s274_s21 = scalar_lea.vmem [#allocation7], %s1232_s12  ;;  %s313_s27 = scalar_lea.vmem [#allocation9], %s1232_s12 }
  0x7b   : > { %707 = vmatprep.subr.mxu1 %v1008_v0  ;;  %709 = vmatprep.mubr.msk.f32.mxu1 %vm1009_vm0, %v1008_v0  ;;  %v316_v12 = vld [vmem:[%s274_s21] sm:$0xff]  ;;  %s694_s5 = sshll.u32 %s995_s18, 7  ;;  %s517_s13 = sshll.u32 %s313_s27, 4  ;;  %s518_s13 = int_to_ptr.vmem [resolvable:$true] %s517_s13 }
  0x7c   : > { %703 = vmatpush3.xpose.msk.msra.mxu0 %vm318_vm1, %v315_v1  ;;  %708 = vmatpush3.msra.mxu1 %v316_v12  ;;  %s1260_s11 = scalar_lea.hbm %s1340_s4, %s694_s5  ;;  %s489_s26 = scalar_lea.sflag [#allocation10], %s1229_s25 }
  0x7d   : > { %s885_s1 = scalar_lea.vmem %s518_s13, 128  ;;  %p1368_p10 = scmp.ne.s32.totalorder %s1355_s28, 0 }
  0x7e   : > { %p886_p4 = scmp.ne.s32.totalorder %s518_s13, %s885_s1  ;;  %s1010_s7 = smov [#allocation9]  }
  0x7f   : > { %705 = vmatmul.mubr.msk.f32.vlgmr.msra.gmra.mrb[0].mxu0 %vm318_vm1, %v317_v3  ;;  %s889_s23 = sshll.u32 %s1010_s7, 4  ;;  %s890_s23 = int_to_ptr.vmem [resolvable:$false] %s889_s23 }
  0x80   : > { %p887_p12 = pnand %p886_p4, %p1368_p10  ;;  %s891_s6 = scalar_lea.vmem %s890_s23, 256 }
  0x81   : > { %p892_p8 = scmp.lt.s32.totalorder %s518_s13, %s890_s23  ;;  %p893_p9 = scmp.lt.s32.totalorder %s891_s6, %s885_s1 }
  0x82   : > { %p888_p1 = pneg %p887_p12 }
  0x83   : > { %p894_p6 = por %p893_p9, %p892_p8 }
  0x85   : > { %p895_p13 = pnand %p894_p6, %p888_p1 }
 0x152   : > { %v391_v4 = vpop.f32.mrb[0].mxu0 }
 0x153   : > { %v706_v5 = vpop.f32.mrb[1].mxu0  ;;  %v396_v6 = vsel %vm395_vm2, %v391_v4, -inf }
 0x154   : > { %397 = vmax.xlane.f32.xlu0 %v396_v6 }
 0x1e1   : > { %v398_v7 = vpop.xlane.xlu0 %397 }
 0x1e2   : > { %v399_v8 = vsub.f32 %v391_v4, %v398_v7 }
 0x1e4   : > { %v400_v9 = vmul.f32 1.442695, %v399_v8 }
 0x1e6   : > { %791 = vpow2.f32 %v400_v9 }
 0x1f0   : > { %v792_v10 = vpop.eup %791 }
 0x1f1   : > { %v402_v11 = vsel %vm395_vm2, %v792_v10, 0.0 }
 0x1f2   : > { %403 = vadd.xlane.f32.xlu0 %v402_v11 }
 0x27f   : > { %v404_v13 = vpop.xlane.xlu0 %403 }
 0x280   : > { %793 = vrcp.f32 %v404_v13 }
 0x28a   : > { %v794_v14 = vpop.eup %793 }
 0x28b   : > { %v407_v15 = vmul.f32 %v794_v14, %v792_v10 }
 0x28d   : > { %710 = vmatmul.mubr.msk.f32.vlgmr.msra.gmra.mrb[0].mxu1 %vm395_vm2, %v407_v15  ;;  %481 = vst.msk [vmem:[%s313_s27] sm:$0xff] %vm395_vm2, %v407_v15 }
 0x28e   : > { %898 = shalt.err (!%p895_p13)
}
 0x28f   : > { %s899_s9 = scalar_lea.hbm %s1260_s11, 128  ;;  %s903_s19 = scalar_lea.hbm %s1340_s4, 256 }
 0x290   : > { %p900_p11 = scmp.ne.s32.totalorder %s1260_s11, %s899_s9  ;;  %p904_p7 = scmp.lt.u32.totalorder %s1260_s11, %s1340_s4 }
 0x291   : > { %p905_p3 = scmp.lt.u32.totalorder %s903_s19, %s899_s9  ;;  %p907_p4 = scmp.lt.u32.totalorder %s899_s9, %s1260_s11 }
 0x292   : > { %p901_p2 = pnand %p900_p11, %p1368_p10 }
 0x293   : > { %p906_p0 = por %p905_p3, %p904_p7 }
 0x294   : > { %p902_p5 = pneg %p901_p2 }
 0x295   : > { %p908_p12 = por %p907_p4, %p906_p0 }
 0x297   : > { %p909_p1 = pnand %p908_p12, %p902_p5 }
 0x299   : > { %912 = shalt.err (!%p909_p1)
}
 0x29a   : > { %719 = dma.vmem_to_hbm [thread:$0]  (%p1368_p10), %s518_s13, 128, %s1260_s11, %s489_s26  }
 0x29b   : > { %s306_s24 = scalar_lea.vmem [#allocation8], %s1232_s12  ;;  %s1286_s14 = scalar_lea.hbm %s1339_s3, %s694_s5 }
 0x29c   : > { %s503_s21 = sshll.u32 %s306_s24, 4  ;;  %s484_s1 = scalar_lea.sflag [#allocation4], %s1229_s25  ;;  %s1288_s21 = int_to_ptr.vmem [resolvable:$true] %s503_s21 }
 0x29d   : > { %s913_s7 = scalar_lea.vmem %s1288_s21, 128  ;;  %s1011_s18 = smov [#allocation8]  }
 0x29e   : > { %p914_p8 = scmp.ne.s32.totalorder %s1288_s21, %s913_s7  ;;  %s917_s12 = sshll.u32 %s1011_s18, 4  ;;  %s918_s12 = int_to_ptr.vmem [resolvable:$false] %s917_s12 }
 0x29f   : > { %s919_s5 = scalar_lea.vmem %s918_s12, 256  ;;  %p920_p13 = scmp.lt.s32.totalorder %s1288_s21, %s918_s12 }
 0x2a0   : > { %p915_p9 = pnand %p914_p8, %p1368_p10  ;;  %p921_p11 = scmp.lt.s32.totalorder %s919_s5, %s913_s7 }
 0x2a2   : > { %p916_p6 = pneg %p915_p9  ;;  %p922_p2 = por %p921_p11, %p920_p13 }
 0x2a4   : > { %p923_p5 = pnand %p922_p2, %p916_p6 }
 0x360   : > { %v477_v16 = vpop.f32.mrb[0].mxu1 }
 0x361   : > { %482 = vst.msk [vmem:[%s306_s24] sm:$0xff] %vm318_vm1, %v477_v16  ;;  %v711_v17 = vpop.f32.mrb[1].mxu1 }
 0x362   : > { %926 = shalt.err (!%p923_p5)
}
 0x363   : > { %s927_s25 = scalar_lea.hbm %s1286_s14, 128  ;;  %s931_s26 = scalar_lea.hbm %s1339_s3, 256 }
 0x364   : > { %p928_p7 = scmp.ne.s32.totalorder %s1286_s14, %s927_s25  ;;  %p932_p4 = scmp.lt.u32.totalorder %s1286_s14, %s1339_s3 }
 0x365   : > { %p933_p12 = scmp.lt.u32.totalorder %s931_s26, %s927_s25  ;;  %p935_p8 = scmp.lt.u32.totalorder %s927_s25, %s1286_s14 }
 0x366   : > { %p929_p3 = pnand %p928_p7, %p1368_p10 }
 0x367   : > { %p934_p1 = por %p933_p12, %p932_p4 }
 0x368   : > { %p930_p0 = pneg %p929_p3 }
 0x369   : > { %p936_p9 = por %p935_p8, %p934_p1 }
 0x36b   : > { %p937_p6 = pnand %p936_p9, %p930_p0 }
 0x36d   : > { %940 = shalt.err (!%p937_p6)
}
 0x36e   : > { %718 = dma.vmem_to_hbm [thread:$0]  (%p1368_p10), %s1288_s21, 128, %s1286_s14, %s484_s1  }
 0x36f PF: > { %s1369_s9 = sld [smem:[#allocation16_spill]]  ;;  %s529_s10 = sand.u32 1, %s983_s15  }
 0x370   : > { %p1370_p13 = scmp.ne.s32.totalorder %s1357_s30, 0  ;;  %s530_s20 = scalar_lea.sflag [#allocation4], %s529_s10 }
 0x375   : > { %p1371_p11 = scmp.ge.s32.totalorder %s1369_s9, 2 }
 0x377   : > { %p733_p2 = pnand %p1371_p11, %p1370_p13 }
 0x379   : > { %974 = dma.done.wait (!%p733_p2), %s530_s20, 128  }
 0x37a   : > { %976 = vsyncadd (!%p733_p2), %s530_s20, 4294967168  ;;  %s539_s19 = scalar_lea.sflag [#allocation10], %s529_s10 }
 0x37b   : > { %978 = dma.done.wait (!%p733_p2), %s539_s19, 128  }
 0x37c   : > { %980 = vsyncadd (!%p733_p2), %s539_s19, 4294967168  ;;  %s27_s20 = sadd.s32 1, %s1369_s9   ;;  %s1372_s28 = sld [smem:[#allocation18_spill]] }
 0x37d   : > { %p24_p5 = scmp.ge.s32.totalorder %s27_s20, 4   ;;  %s1373_s18 = sld [smem:[#allocation15_spill]] }
 0x37e   : > { %s1374_s19 = sld [smem:[#allocation17_spill]]  ;;  %s1375_s15 = smov %s987_s16 }
 0x37f   : > { %s1376_s16 = smov %s991_s17  ;;  %26 = sbr.rel (!%p24_p5) target bundleno = 12 (0xc), region = 118 }
 0x382   : > { %s1377_s17 = smov %s1372_s28 }
 0x386   :  { %544 = vsyncpa [#allocation3], 1 }
 0x387   :  { %546 = vsyncpa [#allocation3 + $0x1], 1 }
 0x388   :  { %547 = vsyncpa [#allocation6], 1 }
 0x389   :  { %549 = vsyncpa [#allocation6 + $0x1], 1 }
 0x38a   :  { %550 = vsyncpa [#allocation4], 1 }
 0x38b   :  { %552 = vsyncpa [#allocation4 + $0x1], 1 }
 0x38c   :  { %553 = vsyncpa [#allocation10], 1 }
 0x38d   :  { %555 = vsyncpa [#allocation10 + $0x1], 1 }

</bundles_post_ra>
